<compile_context>
chip_gen: v5e
topology: v5e:2x2
jax: 0.10.0
libtpu: 0.0.40
codegen_flags: <defaults>
</compile_context>

<pallas_src>
import functools
import math

import jax
import jax.numpy as jnp
from jax import lax
from jax.experimental import pallas as pl
from jax.experimental.pallas import tpu as pltpu

_MEMSPACE = getattr(pltpu, "MemorySpace", None) or getattr(pltpu, "TPUMemorySpace")


def _round_up(x, m):
    return ((x + m - 1) // m) * m


def _cdiv(a, b):
    return -(-a // b)


def _vmem_budgets():
    """(planning budget, scoped-vmem limit) in bytes, with headroom."""
    try:
        phys = int(pltpu.get_tpu_info().vmem_capacity_bytes)
    except Exception:
        phys = 64 << 20                      # conservative: v7x per-TensorCore VMEM
    phys = max(phys, 32 << 20)
    plan = (phys * 5) // 8                   # what the tiling math allocates against
    limit = (phys * 3) // 4                  # explicit scoped limit (headroom above plan)
    return plan, limit


# ---------------------------------------------------------------------------
# Kernels
# ---------------------------------------------------------------------------
def _linear_kernel(x_ref, w_ref, b_ref, o_ref):
    """Fast path: one (tm, K) row tile of x, full-K resident weight, fused bias."""
    o_ref[...] = (
        jnp.dot(x_ref[...], w_ref[...], preferred_element_type=jnp.float32)
        + b_ref[...]
    ).astype(o_ref.dtype)


def _linear_kernel_ktiled(x_ref, w_ref, b_ref, o_ref, acc_ref, *, k_total, tk):
    """K-tiled path: grid (row tiles, K tiles), f32 VMEM accumulator."""
    k = pl.program_id(1)

    @pl.when(k == 0)
    def _():
        acc_ref[...] = jnp.zeros_like(acc_ref)

    xv = x_ref[...]
    if k_total % tk != 0:
        # The last K block reads past the (unpadded) K edge of x; zero the
        # overhang columns so garbage never reaches the accumulator.  (The
        # weight's K overhang is zero-padded in the wrapper.)
        rem = k_total - k * tk
        col = lax.broadcasted_iota(jnp.int32, xv.shape, 1)
        xv = jnp.where(col < rem, xv, 0.0)

    acc_ref[...] += jnp.dot(xv, w_ref[...], preferred_element_type=jnp.float32)

    @pl.when(k == pl.num_programs(1) - 1)
    def _():
        o_ref[...] = (acc_ref[...] + b_ref[...]).astype(o_ref.dtype)


# ---------------------------------------------------------------------------
# Wrapper
# ---------------------------------------------------------------------------
def linear_forward(x, weight, bias, *, tm=None, tk=None,
                   use_bf16_inputs=False, force_k_tiling=False):
    """Pallas forward of nn.Linear: x @ weight.T + bias.

    x      : (M, K)    weight : (N, K)  (PyTorch nn.Linear layout)    bias : (N,)
    returns: (M, N) in x.dtype
    """
    M, K = x.shape
    N, Kw = weight.shape
    assert K == Kw and bias.shape == (N,)

    out_dtype = x.dtype
    in_dtype = jnp.bfloat16 if use_bf16_inputs else x.dtype
    in_bytes = jnp.dtype(in_dtype).itemsize
    out_bytes = jnp.dtype(out_dtype).itemsize

    Np = _round_up(N, 128)                   # lane-dense output / weight columns
    plan_budget, vmem_limit = _vmem_budgets()
    bias_bytes = Np * 4

    x_in = x.astype(in_dtype) if use_bf16_inputs else x
    b_p = jnp.pad(bias, (0, Np - N)).astype(jnp.float32).reshape(1, Np)

    # TODO(synk): the weight pad/transpose (and optional bf16 cast) below is
    # per-call layout plumbing; callers that reuse the classifier should
    # precompute it once (it is a jit-time constant for fixed parameters).

    weight_bytes = K * Np * in_bytes         # single resident copy (fast path)
    use_fast = (not force_k_tiling) and (
        weight_bytes <= min(16 << 20, plan_budget // 3))

    if use_fast:
        w_t = jnp.pad(weight, ((0, Np - N), (0, 0))).T.astype(in_dtype)   # (K, Np)

        x_row_bytes = K * in_bytes
        out_row_bytes = Np * out_bytes
        if tm is None:
            avail = plan_budget - weight_bytes - bias_bytes
            tm_v = avail // (2 * x_row_bytes + 2 * out_row_bytes)
            tm_v = min(tm_v, (16 << 20) // x_row_bytes, _round_up(M, 8))
            tm_v = max(8, (tm_v // 8) * 8)
            if tm_v >= M and M > 8:
                # Give the "parallel" row axis >= 2 grid steps (v7x: 2 TCs/chip).
                tm_v = max(8, _round_up(_cdiv(M, 2), 8))
        else:
            tm_v = max(8, min(_round_up(tm, 8), _round_up(M, 8)))
        nm = _cdiv(M, tm_v)

        out = pl.pallas_call(
            _linear_kernel,
            out_shape=jax.ShapeDtypeStruct((M, Np), out_dtype),
            grid_spec=pltpu.PrefetchScalarGridSpec(
                num_scalar_prefetch=0,
                grid=(nm,),
                in_specs=[
                    pl.BlockSpec((tm_v, K), lambda i: (i, 0)),       # x row tile
                    pl.BlockSpec(memory_space=_MEMSPACE.VMEM),       # resident W^T (1 copy)
                    pl.BlockSpec(memory_space=_MEMSPACE.VMEM),       # resident bias
                ],
                out_specs=pl.BlockSpec((tm_v, Np), lambda i: (i, 0)),
            ),
            compiler_params=pltpu.CompilerParams(
                dimension_semantics=("parallel",),
                vmem_limit_bytes=vmem_limit,
            ),
        )(x_in, w_t, b_p)
        return out[:, :N]

    # ---- K-tiled fallback: weight too large to keep resident in VMEM. ----
    if tk is None:
        tk_by_w = max(128, ((2 << 20) // (Np * in_bytes)) // 128 * 128)
        tk_v = max(128, min(2048, tk_by_w, _round_up(K, 128)))
    else:
        tk_v = max(128, min(_round_up(tk, 128), _round_up(K, 128)))
    nk = _cdiv(K, tk_v)

    # Only the (small) weight is zero-padded on K; x is never copied.
    w_t = jnp.pad(weight, ((0, Np - N), (0, nk * tk_v - K))).T.astype(in_dtype)

    x_row_bytes = tk_v * in_bytes
    fixed = 2 * tk_v * Np * in_bytes + bias_bytes          # double-buffered W tile + bias
    per_row = 2 * x_row_bytes + 2 * Np * out_bytes + Np * 4  # x bufs + out bufs + f32 acc
    if tm is None:
        tm_v = (plan_budget - fixed) // per_row
        tm_v = min(tm_v, (16 << 20) // x_row_bytes, _round_up(M, 8))
        tm_v = max(8, (tm_v // 8) * 8)
        if tm_v >= M and M > 8:
            tm_v = max(8, _round_up(_cdiv(M, 2), 8))
    else:
        tm_v = max(8, min(_round_up(tm, 8), _round_up(M, 8)))
    nm = _cdiv(M, tm_v)

    kernel = functools.partial(_linear_kernel_ktiled, k_total=K, tk=tk_v)
    out = pl.pallas_call(
        kernel,
        out_shape=jax.ShapeDtypeStruct((M, Np), out_dtype),
        grid_spec=pltpu.PrefetchScalarGridSpec(
            num_scalar_prefetch=0,
            grid=(nm, nk),
            in_specs=[
                pl.BlockSpec((tm_v, tk_v), lambda i, k: (i, k)),     # x tile
                pl.BlockSpec((tk_v, Np), lambda i, k: (k, 0)),       # weight K tile
                pl.BlockSpec(memory_space=_MEMSPACE.VMEM),           # resident bias
            ],
            out_specs=pl.BlockSpec((tm_v, Np), lambda i, k: (i, 0)),
            scratch_shapes=[pltpu.VMEM((tm_v, Np), jnp.float32)],
        ),
        compiler_params=pltpu.CompilerParams(
            dimension_semantics=("parallel", "arbitrary"),
            vmem_limit_bytes=vmem_limit,
        ),
    )(x_in, w_t, b_p)
    return out[:, :N]


if __name__ == "__main__":
    # TODO(synk): loss() (CrossEntropy/BCEWithLogits + L1/L2 penalties) is
    # training-time glue, not part of forward(); not implemented as a kernel.

    def make_case(key, M, K, N):
        kx, kw, kb = jax.random.split(key, 3)
        bound = 1.0 / math.sqrt(K)   # nn.Linear's U(-1/sqrt(in), 1/sqrt(in)) init
        w = jax.random.uniform(kw, (N, K), jnp.float32, minval=-bound, maxval=bound)
        b = jax.random.uniform(kb, (N,), jnp.float32, minval=-bound, maxval=bound)
        x = jax.random.normal(kx, (M, K), jnp.float32)
        return x, w, b

    keys = jax.random.split(jax.random.PRNGKey(0), 4)

    # 1) Base tf-idf classifier shapes (fast path, resident weight).
    x, w, b = make_case(keys[0], 8, 512, 16)
    out = jax.block_until_ready(linear_forward(x, w, b))
    ref = x @ w.T + b
    assert out.shape == (8, 16)
    assert jnp.allclose(out, ref, atol=1e-5, rtol=1e-5), "mismatch (base)"

    # 2) Ragged shapes (M, K, N not multiples of 8/128): partial-block path,
    #    no padding/copy of x anywhere.
    x, w, b = make_case(keys[1], 5, 300, 7)
    out = jax.block_until_ready(linear_forward(x, w, b))
    ref = x @ w.T + b
    assert out.shape == (5, 7)
    assert jnp.allclose(out, ref, atol=1e-5, rtol=1e-5), "mismatch (ragged)"

    # 3) K-tiled fallback (forced at small scale): accumulator + pl.when
    #    init/finalize + in-kernel masking of the K overhang (900 % 256 != 0).
    x, w, b = make_case(keys[2], 24, 900, 5)
    out = jax.block_until_ready(
        linear_forward(x, w, b, force_k_tiling=True, tk=256))
    ref = x @ w.T + b
    assert out.shape == (24, 5)
    assert jnp.allclose(out, ref, atol=1e-5, rtol=1e-5), "mismatch (k-tiled)"

    # 4) bf16 input streaming (halved HBM read traffic), f32 accumulation.
    x, w, b = make_case(keys[3], 16, 512, 16)
    out = jax.block_until_ready(linear_forward(x, w, b, use_bf16_inputs=True))
    ref = x @ w.T + b
    assert out.shape == (16, 16)
    assert jnp.allclose(out, ref, atol=5e-2, rtol=5e-2), "mismatch (bf16)"

    print("KERNEL_OK")
</pallas_src>

<mosaic_0001>
module attributes {stable_mosaic.version = 11 : i64} {
  func.func @_linear_kernel(%arg0: i32, %arg1: memref<8x512xf32, #tpu.memory_space<vmem>>, %arg2: memref<512x128xf32, #tpu.memory_space<vmem>>, %arg3: memref<1x128xf32, #tpu.memory_space<vmem>>, %arg4: memref<8x128xf32, #tpu.memory_space<vmem>>) attributes {dimension_semantics = [#tpu.dimension_semantics<parallel>], iteration_bounds = array<i64: 1>, scalar_prefetch = 0 : i64, scratch_operands = 0 : i64, tpu.core_type = #tpu.core_type<tc>, window_params = [{transform_indices = @transform_0, window_bounds = array<i64: 8, 512>}, {pipeline_mode = #tpu.pipeline_mode<synchronous>, transform_indices = @transform_1, window_bounds = array<i64: 512, 128>}, {pipeline_mode = #tpu.pipeline_mode<synchronous>, transform_indices = @transform_2, window_bounds = array<i64: 1, 128>}, {transform_indices = @transform_3, window_bounds = array<i64: 8, 128>}]} {
    %c0 = arith.constant 0 : index
    %c0_0 = arith.constant 0 : index
    %0 = vector.load %arg1[%c0, %c0_0] : memref<8x512xf32, #tpu.memory_space<vmem>>, vector<8x512xf32>
    %c0_1 = arith.constant 0 : index
    %c0_2 = arith.constant 0 : index
    %1 = vector.load %arg2[%c0_1, %c0_2] : memref<512x128xf32, #tpu.memory_space<vmem>>, vector<512x128xf32>
    %cst = arith.constant dense<0.000000e+00> : vector<8x128xf32>
    %2 = tpu.matmul %0, %1, %cst {dimension_numbers = #tpu.dot_dimension_numbers<[1], [0], [0], [1], [0, 0, 1, 1], [], []>} : vector<8x512xf32>, vector<512x128xf32>, vector<8x128xf32> -> vector<8x128xf32>
    %c0_3 = arith.constant 0 : index
    %c0_4 = arith.constant 0 : index
    %3 = vector.load %arg3[%c0_3, %c0_4] : memref<1x128xf32, #tpu.memory_space<vmem>>, vector<1x128xf32>
    %4 = vector.broadcast %3 : vector<1x128xf32> to vector<8x128xf32>
    %5 = arith.addf %2, %4 : vector<8x128xf32>
    %c0_5 = arith.constant 0 : index
    %c0_6 = arith.constant 0 : index
    %6 = vector.load %arg4[%c0_5, %c0_6] : memref<8x128xf32, #tpu.memory_space<vmem>>, vector<8x128xf32>
    tpu.vector_store %arg4[%c0_5, %c0_6], %5 {strides = array<i32>} : memref<8x128xf32, #tpu.memory_space<vmem>>, vector<8x128xf32>,
    return
  }
  func.func @transform_0(%arg0: i32) -> (i32, i32) {
    %c0_i32 = arith.constant 0 : i32
    %c0_i32_0 = arith.constant 0 : i32
    return %arg0, %c0_i32 : i32, i32
  }
  func.func @transform_1(%arg0: i32) -> (i32, i32) {
    %c0_i32 = arith.constant 0 : i32
    %c0_i32_0 = arith.constant 0 : i32
    %c0_i32_1 = arith.constant 0 : i32
    return %c0_i32, %c0_i32_0 : i32, i32
  }
  func.func @transform_2(%arg0: i32) -> (i32, i32) {
    %c0_i32 = arith.constant 0 : i32
    %c0_i32_0 = arith.constant 0 : i32
    %c0_i32_1 = arith.constant 0 : i32
    return %c0_i32, %c0_i32_0 : i32, i32
  }
  func.func @transform_3(%arg0: i32) -> (i32, i32) {
    %c0_i32 = arith.constant 0 : i32
    %c0_i32_0 = arith.constant 0 : i32
    return %arg0, %c0_i32 : i32, i32
  }
}

</mosaic_0001>

<bundles_post_ra>
// kernel: tpu_custom_call.1
= control target key start
LH: loop header
LB: loop body
LE: loop exit
PB: predicated region body
PF: predicated region fallthrough
CT: control target
= control target key end

     0   :  { %8 = vsyncpa [#allocation3], 0  ;;  %s337_s0 = inlined_call_operand.hbm [shape: f32[8,512], index: 0, kind: input, shape index: {}]   ;;  %s338_s1 = inlined_call_operand.hbm [shape: f32[512,128], index: 1, kind: input, shape index: {}]   ;;  %s339_s2 = inlined_call_operand.vmem [shape: f32[1,128], index: 2, kind: input, shape index: {}]   ;;  %s340_s3 = inlined_call_operand.hbm [shape: f32[8,128], index: 3, kind: output, shape index: {}]  }
   0x1   :  { %9 = vsyncpa [#allocation6], 0 }
   0x2   :  { %10 = vsyncpa [#allocation4], 0  ;;  %s16_s14 = sshll.u32 %s337_s0, 4  ;;  %s300_s15 = smov [#allocation2]   ;;  %s17_s14 = int_to_ptr.hbm [resolvable:$true] %s16_s14 }
   0x3   :  { %s18_s16 = sshll.u32 %s300_s15, 4  ;;  %s26_s19 = sshll.u32 %s338_s1, 4  ;;  %s19_s16 = int_to_ptr.vmem [resolvable:$true] %s18_s16  ;;  %s27_s19 = int_to_ptr.hbm [resolvable:$true] %s26_s19 }
   0x4   :  { %21 = dma.hbm_to_vmem [thread:$0]  %s17_s14, 512, %s19_s16, [#allocation3]  }
   0x5   :  { %s301_s20 = smov [#allocation5]   ;;  %s302_s22 = smov 128  }
   0x6   :  { %s28_s21 = sshll.u32 %s301_s20, 4  ;;  %s303_s23 = smov 8   ;;  %s29_s21 = int_to_ptr.vmem [resolvable:$true] %s28_s21 }
   0x7   :  { %34 = dma.hbm_to_vmem [thread:$0]  %s27_s19, 8192, %s29_s21, [#allocation6], %s302_s22, %s302_s22, %s303_s23  }
   0x8   :  { %294 = dma.done.wait [#allocation3], 512  }
   0x9   :  { %295 = vsyncadd [#allocation3], 4294966784 }
   0xa   :  { %296 = dma.done.wait [#allocation6], 8192  }
   0xb   :  { %297 = vsyncadd [#allocation6], 4294959104  ;;  %v96_v0 = vld [vmem:[#allocation5 + $0x178] sm:$0xff]  ;;  %v95_v2 = vld [vmem:[#allocation5 + $0x170] sm:$0xff]  ;;  %s304_s24 = smov [#allocation7]   ;;  %s205_s28 = sshll.u32 %s340_s3, 4  ;;  %s206_s28 = int_to_ptr.hbm [resolvable:$true] %s205_s28 }
   0xc   :  { %v64_v1 = vld [vmem:[#allocation5 + $0x78] sm:$0xff]  ;;  %157 = vmatpush.msra.mxu2 %v96_v0  ;;  %v63_v4 = vld [vmem:[#allocation5 + $0x70] sm:$0xff]  ;;  %v94_v6 = vld [vmem:[#allocation5 + $0x168] sm:$0xff]  ;;  %s203_s25 = sshll.u32 %s304_s24, 4  ;;  %s204_s25 = int_to_ptr.vmem [resolvable:$true] %s203_s25 }
   0xd   :  { %117 = vmatpush.msra.mxu0 %v64_v1  ;;  %v112_v3 = vld [vmem:[#allocation5 + $0x1f8] sm:$0xff]  ;;  %v111_v7 = vld [vmem:[#allocation5 + $0x1f0] sm:$0xff]  ;;  %v62_v8 = vld [vmem:[#allocation5 + $0x68] sm:$0xff] }
   0xe   :  { %v80_v5 = vld [vmem:[#allocation5 + $0xf8] sm:$0xff]  ;;  %177 = vmatpush.msra.mxu3 %v112_v3  ;;  %158 = vmatpush.msra.mxu2 %v95_v2  ;;  %v79_v9 = vld [vmem:[#allocation5 + $0xf0] sm:$0xff]  ;;  %v110_v10 = vld [vmem:[#allocation5 + $0x1e8] sm:$0xff] }
   0xf   :  { %137 = vmatpush.msra.mxu1 %v80_v5  ;;  %118 = vmatpush.msra.mxu0 %v63_v4  ;;  %v93_v11 = vld [vmem:[#allocation5 + $0x160] sm:$0xff]  ;;  %v78_v13 = vld [vmem:[#allocation5 + $0xe8] sm:$0xff]  ;;  %v92_v16 = vld [vmem:[#allocation5 + $0x158] sm:$0xff] }
  0x10   :  { %178 = vmatpush.msra.mxu3 %v111_v7  ;;  %v61_v12 = vld [vmem:[#allocation5 + $0x60] sm:$0xff]  ;;  %159 = vmatpush.msra.mxu2 %v94_v6  ;;  %v60_v17 = vld [vmem:[#allocation5 + $0x58] sm:$0xff]  ;;  %v91_v20 = vld [vmem:[#allocation5 + $0x150] sm:$0xff] }
  0x11   :  { %138 = vmatpush.msra.mxu1 %v79_v9  ;;  %119 = vmatpush.msra.mxu0 %v62_v8  ;;  %v109_v14 = vld [vmem:[#allocation5 + $0x1e0] sm:$0xff]  ;;  %v108_v18 = vld [vmem:[#allocation5 + $0x1d8] sm:$0xff]  ;;  %v59_v21 = vld [vmem:[#allocation5 + $0x50] sm:$0xff] }
  0x12   :  { %v77_v15 = vld [vmem:[#allocation5 + $0xe0] sm:$0xff]  ;;  %179 = vmatpush.msra.mxu3 %v110_v10  ;;  %160 = vmatpush.msra.mxu2 %v93_v11  ;;  %v76_v19 = vld [vmem:[#allocation5 + $0xd8] sm:$0xff]  ;;  %v107_v22 = vld [vmem:[#allocation5 + $0x1d0] sm:$0xff] }
  0x13   :  { %139 = vmatpush.msra.mxu1 %v78_v13  ;;  %120 = vmatpush.msra.mxu0 %v61_v12  ;;  %v75_v23 = vld [vmem:[#allocation5 + $0xd0] sm:$0xff]  ;;  %v90_v24 = vld [vmem:[#allocation5 + $0x148] sm:$0xff]  ;;  %v89_v28 = vld [vmem:[#allocation5 + $0x140] sm:$0xff] }
  0x14   :  { %180 = vmatpush.msra.mxu3 %v109_v14  ;;  %161 = vmatpush.msra.mxu2 %v92_v16  ;;  %v58_v25 = vld [vmem:[#allocation5 + $0x48] sm:$0xff]  ;;  %v57_v29 = vld [vmem:[#allocation5 + $0x40] sm:$0xff]  ;;  %v88_v32 = vld [vmem:[#allocation5 + $0x138] sm:$0xff] }
  0x15   :  { %140 = vmatpush.msra.mxu1 %v77_v15  ;;  %121 = vmatpush.msra.mxu0 %v60_v17  ;;  %v106_v26 = vld [vmem:[#allocation5 + $0x1c8] sm:$0xff]  ;;  %v105_v30 = vld [vmem:[#allocation5 + $0x1c0] sm:$0xff]  ;;  %v56_v33 = vld [vmem:[#allocation5 + $0x38] sm:$0xff] }
  0x16   :  { %181 = vmatpush.msra.mxu3 %v108_v18  ;;  %162 = vmatpush.msra.mxu2 %v91_v20  ;;  %v74_v27 = vld [vmem:[#allocation5 + $0xc8] sm:$0xff]  ;;  %v73_v31 = vld [vmem:[#allocation5 + $0xc0] sm:$0xff]  ;;  %v104_v34 = vld [vmem:[#allocation5 + $0x1b8] sm:$0xff] }
  0x17   :  { %141 = vmatpush.msra.mxu1 %v76_v19  ;;  %122 = vmatpush.msra.mxu0 %v59_v21  ;;  %v72_v35 = vld [vmem:[#allocation5 + $0xb8] sm:$0xff]  ;;  %v87_v36 = vld [vmem:[#allocation5 + $0x130] sm:$0xff]  ;;  %v86_v40 = vld [vmem:[#allocation5 + $0x128] sm:$0xff] }
  0x18   :  { %182 = vmatpush.msra.mxu3 %v107_v22  ;;  %163 = vmatpush.msra.mxu2 %v90_v24  ;;  %v55_v37 = vld [vmem:[#allocation5 + $0x30] sm:$0xff]  ;;  %v54_v41 = vld [vmem:[#allocation5 + $0x28] sm:$0xff]  ;;  %v85_v44 = vld [vmem:[#allocation5 + $0x120] sm:$0xff] }
  0x19   :  { %142 = vmatpush.msra.mxu1 %v75_v23  ;;  %123 = vmatpush.msra.mxu0 %v58_v25  ;;  %v103_v38 = vld [vmem:[#allocation5 + $0x1b0] sm:$0xff]  ;;  %v102_v42 = vld [vmem:[#allocation5 + $0x1a8] sm:$0xff]  ;;  %v53_v45 = vld [vmem:[#allocation5 + $0x20] sm:$0xff] }
  0x1a   :  { %183 = vmatpush.msra.mxu3 %v106_v26  ;;  %164 = vmatpush.msra.mxu2 %v89_v28  ;;  %v71_v39 = vld [vmem:[#allocation5 + $0xb0] sm:$0xff]  ;;  %v70_v43 = vld [vmem:[#allocation5 + $0xa8] sm:$0xff]  ;;  %v101_v46 = vld [vmem:[#allocation5 + $0x1a0] sm:$0xff] }
  0x1b   :  { %143 = vmatpush.msra.mxu1 %v74_v27  ;;  %124 = vmatpush.msra.mxu0 %v57_v29  ;;  %v69_v47 = vld [vmem:[#allocation5 + $0xa0] sm:$0xff]  ;;  %v84_v48 = vld [vmem:[#allocation5 + $0x118] sm:$0xff]  ;;  %v83_v52 = vld [vmem:[#allocation5 + $0x110] sm:$0xff] }
  0x1c   :  { %184 = vmatpush.msra.mxu3 %v105_v30  ;;  %165 = vmatpush.msra.mxu2 %v88_v32  ;;  %v52_v49 = vld [vmem:[#allocation5 + $0x18] sm:$0xff]  ;;  %v51_v53 = vld [vmem:[#allocation5 + $0x10] sm:$0xff]  ;;  %v82_v56 = vld [vmem:[#allocation5 + $0x108] sm:$0xff] }
  0x1d   :  { %144 = vmatpush.msra.mxu1 %v73_v31  ;;  %125 = vmatpush.msra.mxu0 %v56_v33  ;;  %v100_v50 = vld [vmem:[#allocation5 + $0x198] sm:$0xff]  ;;  %v99_v54 = vld [vmem:[#allocation5 + $0x190] sm:$0xff]  ;;  %v50_v57 = vld [vmem:[#allocation5 + $0x8] sm:$0xff] }
  0x1e   :  { %185 = vmatpush.msra.mxu3 %v104_v34  ;;  %166 = vmatpush.msra.mxu2 %v87_v36  ;;  %v68_v51 = vld [vmem:[#allocation5 + $0x98] sm:$0xff]  ;;  %v67_v55 = vld [vmem:[#allocation5 + $0x90] sm:$0xff]  ;;  %v98_v58 = vld [vmem:[#allocation5 + $0x188] sm:$0xff] }
  0x1f   :  { %145 = vmatpush.msra.mxu1 %v72_v35  ;;  %126 = vmatpush.msra.mxu0 %v55_v37  ;;  %v66_v59 = vld [vmem:[#allocation5 + $0x88] sm:$0xff]  ;;  %v81_v60 = vld [vmem:[#allocation5 + $0x100] sm:$0xff]  ;;  %v47_v62 = vld [vmem:[#allocation2 + $0x10] sm:$0xff] }
  0x20   :  { %186 = vmatpush.msra.mxu3 %v103_v38  ;;  %167 = vmatpush.msra.mxu2 %v86_v40  ;;  %v49_v61 = vld [vmem:[#allocation5] sm:$0xff]  ;;  %v48_v1 = vld [vmem:[#allocation2 + $0x18] sm:$0xff]  ;;  %v46_v3 = vld [vmem:[#allocation2 + $0x8] sm:$0xff] }
  0x21   :  { %146 = vmatpush.msra.mxu1 %v71_v39  ;;  %127 = vmatpush.msra.mxu0 %v54_v41  ;;  %v97_v63 = vld [vmem:[#allocation5 + $0x180] sm:$0xff] }
  0x22   :  { %187 = vmatpush.msra.mxu3 %v102_v42  ;;  %168 = vmatpush.msra.mxu2 %v85_v44  ;;  %v45_v0 = vld [vmem:[#allocation2] sm:$0xff] }
  0x23   :  { %147 = vmatpush.msra.mxu1 %v70_v43  ;;  %128 = vmatpush.msra.mxu0 %v53_v45  ;;  %v65_v2 = vld [vmem:[#allocation5 + $0x80] sm:$0xff] }
  0x24   :  { %188 = vmatpush.msra.mxu3 %v101_v46  ;;  %169 = vmatpush.msra.mxu2 %v84_v48  ;;  %v221_v4 = vld [vmem:[%s339_s2] ss:$0 sm:$0xff] }
  0x25   :  { %148 = vmatpush.msra.mxu1 %v69_v47  ;;  %129 = vmatpush.msra.mxu0 %v52_v49 }
  0x26   :  { %189 = vmatpush.msra.mxu3 %v100_v50  ;;  %170 = vmatpush.msra.mxu2 %v83_v52 }
  0x27   :  { %149 = vmatpush.msra.mxu1 %v68_v51  ;;  %130 = vmatpush.msra.mxu0 %v51_v53 }
  0x28   :  { %190 = vmatpush.msra.mxu3 %v99_v54  ;;  %171 = vmatpush.msra.mxu2 %v82_v56 }
  0x29   :  { %150 = vmatpush.msra.mxu1 %v67_v55  ;;  %131 = vmatpush.msra.mxu0 %v50_v57 }
  0x2a   :  { %191 = vmatpush.msra.mxu3 %v98_v58  ;;  %172 = vmatpush.msra.mxu2 %v81_v60 }
  0x2b   :  { %151 = vmatpush.msra.mxu1 %v66_v59  ;;  %132 = vmatpush.msra.mxu0 %v49_v61 }
  0x2c   :  { %173 = vmatmul.f32.vlgmr.msra.gmra.mxu2 %v47_v62  ;;  %192 = vmatpush.msra.mxu3 %v97_v63 }
  0x2d   :  { %133 = vmatmul.f32.vlgmr.msra.gmra.mxu0 %v45_v0  ;;  %193 = vmatmul.f32.vlgmr.msra.gmra.mxu3 %v48_v1 }
  0x2e   :  { %152 = vmatpush.msra.mxu1 %v65_v2 }
  0x2f   :  { %153 = vmatmul.f32.vlgmr.msra.gmra.mxu1 %v46_v3 }
  0xaa   :  { %v134_v5 = vpop.f32.mrf.mxu0 }
  0xab   :  { %v135_v6 = vadd.f32 %v221_v4, %v134_v5 }
  0xac   :  { %v154_v7 = vpop.f32.mrf.mxu1 }
  0xad   :  { %v155_v8 = vadd.f32 %v154_v7, %v135_v6 }
  0xaf   :  { %v174_v9 = vpop.f32.mrf.mxu2 }
  0xb0   :  { %v175_v10 = vadd.f32 %v174_v9, %v155_v8  ;;  %v194_v11 = vpop.f32.mrf.mxu3 }
  0xb2   :  { %v195_v12 = vadd.f32 %v194_v11, %v175_v10 }
  0xb4   :  { %197 = vst [vmem:[#allocation7] sm:$0xff] %v195_v12 }
  0xb5   :  { %208 = dma.vmem_to_hbm [thread:$0]  %s204_s25, 128, %s206_s28, [#allocation4]  }
  0xb6   :  { %298 = dma.done.wait [#allocation4], 128  }
  0xb7   :  { %299 = vsyncadd [#allocation4], 4294967168 }
  0xb8   :  { %213 = vsyncpa [#allocation3], 1 }
  0xb9   :  { %214 = vsyncpa [#allocation6], 1 }
  0xba   :  { %215 = vsyncpa [#allocation4], 1 }

</bundles_post_ra>
